<compile_context>
chip_gen: v7x
topology: tpu7x:2x2x1
jax: 0.10.0
libtpu: 0.0.40
codegen_flags: <defaults>
</compile_context>

<pallas_src>
import functools

import jax
import jax.numpy as jnp
from jax.experimental import pallas as pl
from jax.experimental.pallas import tpu as pltpu

# ----- HGMM constructor configuration -------------------------------------
FEATURE_SIZE = 32    # D
NUM_SCENES = 4       # S
NUM_EVENTS = 8       # E  (power of two -> halving segment max)
COVARIANCE_TYPE = "diag"
EVENT_TEMPERATURE = 1.0
SCENE_TEMPERATURE = 1.0
LOC_INIT_STD = 1.0
SCALE_INIT_STD = 10.0   # -> effective Normal scale = 0.1 * scales = 1.0
B, T = 2, 8


def hgmm_kernel(x_ref, prm_ref, out_ref, *, D, S, E, Bb,
                row_a, row_lep, row_lsp, row_tile, row_untile,
                row_segb, row_segt, inv_et, inv_st):
    SE = S * E
    BT = x_ref.shape[0]

    # ---- unpack the stacked (BT, 3D) data slab -----------------------------
    mulv = x_ref[:, 0:2 * D]             # [mean | log_var], reused as matmul LHS
    mu = mulv[:, 0:D]
    lv = mulv[:, D:2 * D]
    epsv = x_ref[:, 2 * D:3 * D]

    std = jnp.exp(0.5 * lv)              # reused for var and rsample
    var = std * std
    z = mu + std * epsv

    # ---- unpack the constant parameter slab (static slices, no extra DMAs) -
    p1 = prm_ref[0:D, 0:SE]                              # 0.5/sigma^2  (D, SE)
    p2 = prm_ref[D:3 * D, 0:SE]                          # [-loc/s^2;-.5](2D,SE)
    a_row = prm_ref[row_a:row_a + 1, 0:SE]               # KL constant  (1, SE)
    lep = prm_ref[row_lep:row_lep + 1, 0:SE]             # log ev prior (1, SE)
    lsp = prm_ref[row_lsp:row_lsp + 1, 0:S]              # log sc prior (1, S)
    tile_m = prm_ref[row_tile:row_tile + S, 0:SE]        # (S, SE)  S -> SE
    untile_m = prm_ref[row_untile:row_untile + SE, 0:S]  # (SE, S)  SE -> S sum
    segb = prm_ref[row_segb:row_segb + Bb, 0:BT]         # (B, BT)  T-reduction
    segt = prm_ref[row_segt:row_segt + BT, 0:Bb]         # (BT, B)  B broadcast

    # ---- fused KL: kld[t, e*S+s] = (var+mu^2)@P1 + [mu|lv]@P2 + a ----------
    kld = (jnp.dot(var + mu * mu, p1, preferred_element_type=jnp.float32)
           + jnp.dot(mulv, p2, preferred_element_type=jnp.float32)
           + a_row)                                                   # (BT, SE)

    score = lep - kld                                                 # (BT, SE)

    # per-scene max over events: columns interleaved (col = e*S + s), so a
    # log2(E)-step halving tree on lane slices reduces per scene.
    r = score
    width = SE
    while width > S:
        half = width // 2
        r = jnp.maximum(r[:, :half], r[:, half:width])
        width = half
    segmax = r                                                        # (BT, S)

    if inv_et == 1.0:
        scaled, sm = score, segmax
    else:
        scaled, sm = score * inv_et, segmax * inv_et

    sm_b = jnp.dot(sm, tile_m, preferred_element_type=jnp.float32)    # (BT, SE)
    shifted = scaled - sm_b
    pe = jnp.exp(shifted)
    pe_sum = jnp.dot(pe, untile_m, preferred_element_type=jnp.float32)  # (BT,S)
    log_pe_sum = jnp.log(pe_sum)
    lep_post = shifted - jnp.dot(log_pe_sum, tile_m,
                                 preferred_element_type=jnp.float32)  # (BT, SE)

    if inv_et == 1.0:
        lse_S = segmax + log_pe_sum                                   # (BT, S)
    else:
        p0 = jnp.exp(score - jnp.dot(segmax, tile_m,
                                     preferred_element_type=jnp.float32))
        lse_S = segmax + jnp.log(jnp.dot(p0, untile_m,
                                         preferred_element_type=jnp.float32))

    # ---- scene posterior: per-batch sum over T, add prior, softmax over S --
    logits = jnp.dot(segb, lse_S, preferred_element_type=jnp.float32) + lsp
    if inv_st != 1.0:
        logits = logits * inv_st
    mS = jnp.max(logits, axis=-1, keepdims=True)
    lsp_post = logits - (jnp.log(jnp.sum(jnp.exp(logits - mS), axis=-1,
                                         keepdims=True)) + mS)        # (B, S)

    lsp_bS = jnp.dot(segt, lsp_post, preferred_element_type=jnp.float32)  # (BT,S)
    lsp_bF = jnp.dot(lsp_bS, tile_m, preferred_element_type=jnp.float32)  # (BT,SE)

    # ---- fused posteriors / losses (single full-width exp) -----------------
    lcp = lep_post + lsp_bF                     # log class posterior
    w = jnp.exp(lcp)                            # scene_post * event_post
    kld_col = jnp.sum(w * kld, axis=-1, keepdims=True)                # (BT, 1)
    ece_col = -jnp.sum(w * lep, axis=-1, keepdims=True)               # (BT, 1)
    sce_col = -jnp.sum(jnp.exp(lsp_bS) * lsp, axis=-1, keepdims=True)  # (BT, 1)

    # pack the three per-row scalars into one 4-lane block (iota + select)
    lane4 = jax.lax.broadcasted_iota(jnp.int32, (BT, 4), 1)
    stats4 = jnp.where(lane4 == 0, kld_col,
             jnp.where(lane4 == 1, ece_col,
             jnp.where(lane4 == 2, sce_col, 0.0)))                    # (BT, 4)

    # ---- packed lane-dense (BT, 128) output slab ----------------------------
    base = D + 2 * SE
    out_ref[:, 0:D] = z
    out_ref[:, D:D + SE] = lep_post                     # log event posterior
    out_ref[:, D + SE:base] = lcp                       # log class posterior
    out_ref[:, base:base + S] = lsp_bS                  # log scene posterior
    out_ref[:, base + S:base + S + 4] = stats4          # [kld, ece, sce, 0]
    # lanes >= base+S+4 are never read by the wrapper; left uninitialized
    # (do not alias/donate this buffer expecting zeros).


def hgmm_forward(mean, log_var, eps, locs, scales,
                 log_event_weights, log_scene_weights,
                 event_temperature=EVENT_TEMPERATURE,
                 scene_temperature=SCENE_TEMPERATURE):
    Bb, Tt, D = mean.shape
    S, E, _ = locs.shape
    SE = S * E
    BT = Bb * Tt
    assert E & (E - 1) == 0, "halving segment reduce assumes num_events is a power of 2"

    # ----- one-time parameter prep (plain-JAX glue outside the kernel) ------
    log_event_probs = jnp.maximum(jax.nn.log_softmax(log_event_weights, -1), -20.0)
    log_scene_probs = jnp.maximum(jax.nn.log_softmax(log_scene_weights, -1), -20.0)

    scale_p = scales * 0.1                        # covariance_type == 'diag'
    inv_var_p = 1.0 / (scale_p * scale_p)         # (S, E, D)

    def to_cols(x):   # (S, E, D) -> (D, S*E), interleaved column = e*S + s
        return jnp.transpose(x, (2, 1, 0)).reshape(D, SE)

    # 0.5 folded into P1 so the kernel LHS is plain (var + mu^2)
    P1 = (0.5 * to_cols(inv_var_p)).astype(jnp.float32)               # (D, SE)
    P2 = jnp.concatenate([to_cols(-(locs * inv_var_p)),
                          jnp.full((D, SE), -0.5, jnp.float32)], axis=0)  # (2D,SE)
    a_row = ((jnp.log(scale_p) + 0.5 * locs * locs * inv_var_p).sum(-1)
             .T.reshape(1, SE) - 0.5 * D).astype(jnp.float32)         # (1, SE)
    lep_row = log_event_probs.T.reshape(1, SE).astype(jnp.float32)    # (1, SE)
    lsp_row = log_scene_probs.reshape(1, S).astype(jnp.float32)       # (1, S)
    tileM = jnp.tile(jnp.eye(S, dtype=jnp.float32), (1, E))           # (S, SE)
    untileM = tileM.T                                                 # (SE, S)
    segb = jnp.repeat(jnp.eye(Bb, dtype=jnp.float32), Tt, axis=1)     # (B, BT)
    segt = segb.T                                                     # (BT, B)

    # ----- single packed parameter slab (one DMA), 8-row aligned sections ---
    align8 = lambda v: (v + 7) // 8 * 8
    row_a = align8(3 * D)
    row_lep = row_a + 8
    row_lsp = row_lep + 8
    row_tile = row_lsp + 8
    row_untile = align8(row_tile + S)
    row_segb = align8(row_untile + SE)
    row_segt = align8(row_segb + Bb)
    n_rows = align8(row_segt + BT)

    prm = jnp.zeros((n_rows, 128), jnp.float32)
    prm = prm.at[0:D, 0:SE].set(P1)
    prm = prm.at[D:3 * D, 0:SE].set(P2)
    prm = prm.at[row_a:row_a + 1, 0:SE].set(a_row)
    prm = prm.at[row_lep:row_lep + 1, 0:SE].set(lep_row)
    prm = prm.at[row_lsp:row_lsp + 1, 0:S].set(lsp_row)
    prm = prm.at[row_tile:row_tile + S, 0:SE].set(tileM)
    prm = prm.at[row_untile:row_untile + SE, 0:S].set(untileM)
    prm = prm.at[row_segb:row_segb + Bb, 0:BT].set(segb)
    prm = prm.at[row_segt:row_segt + BT, 0:Bb].set(segt)

    # ----- single stacked data slab (one DMA): [mean | log_var | eps] -------
    x = jnp.concatenate([mean, log_var, eps], axis=-1).reshape(BT, 3 * D)
    x = x.astype(jnp.float32)

    inv_et = 1.0 / max(float(event_temperature), 0.01)
    inv_st = 1.0 / max(float(scene_temperature), 0.01)

    out_w = 128
    base = D + 2 * SE
    assert base + S + 4 <= out_w

    kernel = functools.partial(
        hgmm_kernel, D=D, S=S, E=E, Bb=Bb,
        row_a=row_a, row_lep=row_lep, row_lsp=row_lsp, row_tile=row_tile,
        row_untile=row_untile, row_segb=row_segb, row_segt=row_segt,
        inv_et=inv_et, inv_st=inv_st)

    vspec = pl.BlockSpec(memory_space=pltpu.MemorySpace.VMEM)
    out = pl.pallas_call(
        kernel,
        out_shape=jax.ShapeDtypeStruct((BT, out_w), jnp.float32),
        in_specs=[vspec, vspec],
        out_specs=vspec,
    )(x, prm)

    # ----- unpack the slab back to the reference layouts --------------------
    out3 = out.reshape(Bb, Tt, out_w)
    z = out3[..., 0:D]
    lepo = jnp.transpose(out3[..., D:D + SE].reshape(Bb, Tt, E, S), (0, 1, 3, 2))
    lcpo = jnp.transpose(out3[..., D + SE:base].reshape(Bb, Tt, E, S),
                         (0, 1, 3, 2)).reshape(Bb, Tt, SE)
    lspo = out3[:, 0, base:base + S]
    kld = out3[..., base + S]
    ece = out3[..., base + S + 1]
    sce = out3[:, 0, base + S + 2] / float(Tt)
    return z, kld, ece, sce, lepo, lspo, lcpo


def hgmm_reference(mean, log_var, eps, locs, scales,
                   log_event_weights, log_scene_weights,
                   event_temperature, scene_temperature):
    """Pure-JAX port of the PyTorch forward (diag covariance, unsupervised)."""
    Bb, Tt, D = mean.shape
    S, E, _ = locs.shape
    log_event_probs = jnp.maximum(jax.nn.log_softmax(log_event_weights, -1), -20.0)
    log_scene_probs = jnp.maximum(jax.nn.log_softmax(log_scene_weights, -1), -20.0)
    scale_p = scales * 0.1
    mu = mean[:, :, None, None, :]
    lvb = log_var[:, :, None, None, :]
    varb = jnp.exp(lvb)
    kld = (jnp.log(scale_p)[None, None] - 0.5 * lvb
           + (varb + (mu - locs[None, None]) ** 2) / (2.0 * scale_p[None, None] ** 2)
           - 0.5).sum(-1)                                                # (B,T,S,E)
    et = max(event_temperature, 0.01)
    st = max(scene_temperature, 0.01)
    log_event_posterior = jax.nn.log_softmax((log_event_probs - kld) / et, axis=-1)
    event_posterior = jnp.exp(log_event_posterior)
    scene_logits = (jax.scipy.special.logsumexp(log_event_probs - kld, axis=-1).sum(1)
                    + log_scene_probs) / st                               # (B, S)
    log_scene_posterior = jax.nn.log_softmax(scene_logits, axis=-1)
    scene_posterior = jnp.exp(log_scene_posterior)
    log_class_posterior = (log_event_posterior
                           + log_scene_posterior[:, None, :, None]).reshape(Bb, Tt, S * E)
    kld_e = (event_posterior * kld).sum(-1)
    event_ce = -(event_posterior * log_event_probs).sum(-1)
    kld_out = (scene_posterior[:, None] * kld_e).sum(-1)
    event_ce_out = (scene_posterior[:, None] * event_ce).sum(-1)
    scene_ce = -(scene_posterior * log_scene_probs).sum(-1)
    z = mean + jnp.exp(0.5 * log_var) * eps
    return (z, kld_out, event_ce_out, scene_ce / float(Tt),
            log_event_posterior, log_scene_posterior, log_class_posterior)


if __name__ == "__main__":
    key = jax.random.PRNGKey(0)
    k1, k2, k3, k4 = jax.random.split(key, 4)

    # Inputs: inputs['params'] = (mean, log_var), shape (B, T, D).
    mean = jax.random.normal(k1, (B, T, FEATURE_SIZE), jnp.float32)
    log_var = 0.5 * jax.random.normal(k2, (B, T, FEATURE_SIZE), jnp.float32)
    # rsample noise (torch uses its own RNG; here it is an explicit input).
    eps = jax.random.normal(k3, (B, T, FEATURE_SIZE), jnp.float32)

    # Deterministic parameter init, matching HGMM.__init__ for 'diag'.
    locs = LOC_INIT_STD * jax.random.normal(
        k4, (NUM_SCENES, NUM_EVENTS, FEATURE_SIZE), jnp.float32)
    scales = SCALE_INIT_STD * jnp.ones(
        (NUM_SCENES, NUM_EVENTS, FEATURE_SIZE), jnp.float32)
    log_scene_weights = jnp.log(jnp.full((NUM_SCENES,), 1.0 / NUM_SCENES, jnp.float32))
    log_event_weights = jnp.log(jnp.full((NUM_SCENES, NUM_EVENTS),
                                         1.0 / NUM_EVENTS, jnp.float32))

    outs = hgmm_forward(mean, log_var, eps, locs, scales,
                        log_event_weights, log_scene_weights)
    outs = jax.block_until_ready(outs)

    refs = hgmm_reference(mean, log_var, eps, locs, scales,
                          log_event_weights, log_scene_weights,
                          EVENT_TEMPERATURE, SCENE_TEMPERATURE)
    names = ["z", "kld", "event_ce", "scene_ce",
             "log_event_posterior", "log_scene_posterior", "log_class_posterior"]
    for n, o, r in zip(names, outs, refs):
        assert o.shape == r.shape, (n, o.shape, r.shape)
        if not jnp.allclose(o, r, rtol=2e-3, atol=2e-3):
            raise AssertionError(
                f"mismatch in {n}: max abs err {float(jnp.max(jnp.abs(o - r)))}")
    print("KERNEL_OK")
</pallas_src>

<mosaic_0001>
module attributes {stable_mosaic.version = 11 : i64} {
  func.func @hgmm_kernel(%arg0: memref<16x96xf32, #tpu.memory_space<vmem>>, %arg1: memref<184x128xf32, #tpu.memory_space<vmem>>, %arg2: memref<16x128xf32, #tpu.memory_space<vmem>>) attributes {dimension_semantics = [], scalar_prefetch = 0 : i64, scratch_operands = 0 : i64, tpu.core_type = #tpu.core_type<tc>} {
    %c0 = arith.constant 0 : index
    %c0_0 = arith.constant 0 : index
    %0 = vector.load %arg0[%c0, %c0_0] : memref<16x96xf32, #tpu.memory_space<vmem>>, vector<16x64xf32>
    %1 = vector.extract_strided_slice %0 {offsets = [0, 0], sizes = [16, 32], strides = [1, 1]} : vector<16x64xf32> to vector<16x32xf32>
    %2 = vector.extract_strided_slice %0 {offsets = [0, 32], sizes = [16, 32], strides = [1, 1]} : vector<16x64xf32> to vector<16x32xf32>
    %c0_1 = arith.constant 0 : index
    %c64 = arith.constant 64 : index
    %3 = vector.load %arg0[%c0_1, %c64] : memref<16x96xf32, #tpu.memory_space<vmem>>, vector<16x32xf32>
    %cst = arith.constant 5.000000e-01 : f32
    %4 = vector.broadcast %cst : f32 to vector<16x32xf32>
    %5 = arith.mulf %4, %2 : vector<16x32xf32>
    %6 = math.exp %5 : vector<16x32xf32>
    %7 = arith.mulf %6, %6 : vector<16x32xf32>
    %8 = arith.mulf %6, %3 : vector<16x32xf32>
    %9 = arith.addf %1, %8 : vector<16x32xf32>
    %c0_2 = arith.constant 0 : index
    %c0_3 = arith.constant 0 : index
    %10 = vector.load %arg1[%c0_2, %c0_3] : memref<184x128xf32, #tpu.memory_space<vmem>>, vector<32x32xf32>
    %c32 = arith.constant 32 : index
    %c0_4 = arith.constant 0 : index
    %11 = vector.load %arg1[%c32, %c0_4] : memref<184x128xf32, #tpu.memory_space<vmem>>, vector<64x32xf32>
    %c96 = arith.constant 96 : index
    %c0_5 = arith.constant 0 : index
    %12 = vector.load %arg1[%c96, %c0_5] : memref<184x128xf32, #tpu.memory_space<vmem>>, vector<1x32xf32>
    %c104 = arith.constant 104 : index
    %c0_6 = arith.constant 0 : index
    %13 = vector.load %arg1[%c104, %c0_6] : memref<184x128xf32, #tpu.memory_space<vmem>>, vector<1x32xf32>
    %c112 = arith.constant 112 : index
    %c0_7 = arith.constant 0 : index
    %14 = vector.load %arg1[%c112, %c0_7] : memref<184x128xf32, #tpu.memory_space<vmem>>, vector<1x4xf32>
    %c120 = arith.constant 120 : index
    %c0_8 = arith.constant 0 : index
    %15 = vector.load %arg1[%c120, %c0_8] : memref<184x128xf32, #tpu.memory_space<vmem>>, vector<4x32xf32>
    %c128 = arith.constant 128 : index
    %c0_9 = arith.constant 0 : index
    %16 = vector.load %arg1[%c128, %c0_9] : memref<184x128xf32, #tpu.memory_space<vmem>>, vector<32x4xf32>
    %c160 = arith.constant 160 : index
    %c0_10 = arith.constant 0 : index
    %17 = vector.load %arg1[%c160, %c0_10] : memref<184x128xf32, #tpu.memory_space<vmem>>, vector<2x16xf32>
    %c168 = arith.constant 168 : index
    %c0_11 = arith.constant 0 : index
    %18 = vector.load %arg1[%c168, %c0_11] : memref<184x128xf32, #tpu.memory_space<vmem>>, vector<16x2xf32>
    %19 = arith.mulf %1, %1 : vector<16x32xf32>
    %20 = arith.addf %7, %19 : vector<16x32xf32>
    %cst_12 = arith.constant dense<0.000000e+00> : vector<16x32xf32>
    %21 = tpu.matmul %20, %10, %cst_12 {dimension_numbers = #tpu.dot_dimension_numbers<[1], [0], [0], [1], [0, 0, 1, 1], [], []>} : vector<16x32xf32>, vector<32x32xf32>, vector<16x32xf32> -> vector<16x32xf32>
    %cst_13 = arith.constant dense<0.000000e+00> : vector<16x32xf32>
    %22 = tpu.matmul %0, %11, %cst_13 {dimension_numbers = #tpu.dot_dimension_numbers<[1], [0], [0], [1], [0, 0, 1, 1], [], []>} : vector<16x64xf32>, vector<64x32xf32>, vector<16x32xf32> -> vector<16x32xf32>
    %23 = arith.addf %21, %22 : vector<16x32xf32>
    %24 = vector.broadcast %12 : vector<1x32xf32> to vector<16x32xf32>
    %25 = arith.addf %23, %24 : vector<16x32xf32>
    %26 = vector.broadcast %13 : vector<1x32xf32> to vector<16x32xf32>
    %27 = arith.subf %26, %25 : vector<16x32xf32>
    %28 = vector.extract_strided_slice %27 {offsets = [0, 0], sizes = [16, 16], strides = [1, 1]} : vector<16x32xf32> to vector<16x16xf32>
    %29 = vector.extract_strided_slice %27 {offsets = [0, 16], sizes = [16, 16], strides = [1, 1]} : vector<16x32xf32> to vector<16x16xf32>
    %30 = arith.maximumf %28, %29 : vector<16x16xf32>
    %31 = vector.extract_strided_slice %30 {offsets = [0, 0], sizes = [16, 8], strides = [1, 1]} : vector<16x16xf32> to vector<16x8xf32>
    %32 = vector.extract_strided_slice %30 {offsets = [0, 8], sizes = [16, 8], strides = [1, 1]} : vector<16x16xf32> to vector<16x8xf32>
    %33 = arith.maximumf %31, %32 : vector<16x8xf32>
    %34 = vector.extract_strided_slice %33 {offsets = [0, 0], sizes = [16, 4], strides = [1, 1]} : vector<16x8xf32> to vector<16x4xf32>
    %35 = vector.extract_strided_slice %33 {offsets = [0, 4], sizes = [16, 4], strides = [1, 1]} : vector<16x8xf32> to vector<16x4xf32>
    %36 = arith.maximumf %34, %35 : vector<16x4xf32>
    %cst_14 = arith.constant dense<0.000000e+00> : vector<16x32xf32>
    %37 = tpu.matmul %36, %15, %cst_14 {dimension_numbers = #tpu.dot_dimension_numbers<[1], [0], [0], [1], [0, 0, 1, 1], [], []>} : vector<16x4xf32>, vector<4x32xf32>, vector<16x32xf32> -> vector<16x32xf32>
    %38 = arith.subf %27, %37 : vector<16x32xf32>
    %39 = math.exp %38 : vector<16x32xf32>
    %cst_15 = arith.constant dense<0.000000e+00> : vector<16x4xf32>
    %40 = tpu.matmul %39, %16, %cst_15 {dimension_numbers = #tpu.dot_dimension_numbers<[1], [0], [0], [1], [0, 0, 1, 1], [], []>} : vector<16x32xf32>, vector<32x4xf32>, vector<16x4xf32> -> vector<16x4xf32>
    %41 = math.log %40 : vector<16x4xf32>
    %cst_16 = arith.constant dense<0.000000e+00> : vector<16x32xf32>
    %42 = tpu.matmul %41, %15, %cst_16 {dimension_numbers = #tpu.dot_dimension_numbers<[1], [0], [0], [1], [0, 0, 1, 1], [], []>} : vector<16x4xf32>, vector<4x32xf32>, vector<16x32xf32> -> vector<16x32xf32>
    %43 = arith.subf %38, %42 : vector<16x32xf32>
    %44 = arith.addf %36, %41 : vector<16x4xf32>
    %cst_17 = arith.constant dense<0.000000e+00> : vector<2x4xf32>
    %45 = tpu.matmul %17, %44, %cst_17 {dimension_numbers = #tpu.dot_dimension_numbers<[1], [0], [0], [1], [0, 0, 1, 1], [], []>} : vector<2x16xf32>, vector<16x4xf32>, vector<2x4xf32> -> vector<2x4xf32>
    %46 = vector.broadcast %14 : vector<1x4xf32> to vector<2x4xf32>
    %47 = arith.addf %45, %46 : vector<2x4xf32>
    %cst_18 = arith.constant dense<0xFF800000> : vector<2xf32>
    %48 = vector.multi_reduction <maximumf>, %47, %cst_18 [1] : vector<2x4xf32> to vector<2xf32>
    %49 = vector.shape_cast %48 : vector<2xf32> to vector<2x1xf32>
    %50 = vector.broadcast %49 : vector<2x1xf32> to vector<2x4xf32>
    %51 = arith.subf %47, %50 : vector<2x4xf32>
    %52 = math.exp %51 : vector<2x4xf32>
    %cst_19 = arith.constant dense<0.000000e+00> : vector<2xf32>
    %53 = vector.multi_reduction <add>, %52, %cst_19 [1] : vector<2x4xf32> to vector<2xf32>
    %54 = vector.shape_cast %53 : vector<2xf32> to vector<2x1xf32>
    %55 = math.log %54 : vector<2x1xf32>
    %56 = arith.addf %55, %49 : vector<2x1xf32>
    %57 = vector.broadcast %56 : vector<2x1xf32> to vector<2x4xf32>
    %58 = arith.subf %47, %57 : vector<2x4xf32>
    %cst_20 = arith.constant dense<0.000000e+00> : vector<16x4xf32>
    %59 = tpu.matmul %18, %58, %cst_20 {dimension_numbers = #tpu.dot_dimension_numbers<[1], [0], [0], [1], [0, 0, 1, 1], [], []>} : vector<16x2xf32>, vector<2x4xf32>, vector<16x4xf32> -> vector<16x4xf32>
    %cst_21 = arith.constant dense<0.000000e+00> : vector<16x32xf32>
    %60 = tpu.matmul %59, %15, %cst_21 {dimension_numbers = #tpu.dot_dimension_numbers<[1], [0], [0], [1], [0, 0, 1, 1], [], []>} : vector<16x4xf32>, vector<4x32xf32>, vector<16x32xf32> -> vector<16x32xf32>
    %61 = arith.addf %43, %60 : vector<16x32xf32>
    %62 = math.exp %61 : vector<16x32xf32>
    %63 = arith.mulf %62, %25 : vector<16x32xf32>
    %cst_22 = arith.constant dense<0.000000e+00> : vector<16xf32>
    %64 = vector.multi_reduction <add>, %63, %cst_22 [1] : vector<16x32xf32> to vector<16xf32>
    %65 = vector.shape_cast %64 : vector<16xf32> to vector<16x1xf32>
    %66 = vector.broadcast %13 : vector<1x32xf32> to vector<16x32xf32>
    %67 = arith.mulf %62, %66 : vector<16x32xf32>
    %cst_23 = arith.constant dense<0.000000e+00> : vector<16xf32>
    %68 = vector.multi_reduction <add>, %67, %cst_23 [1] : vector<16x32xf32> to vector<16xf32>
    %69 = vector.shape_cast %68 : vector<16xf32> to vector<16x1xf32>
    %cst_24 = arith.constant 0.000000e+00 : f32
    %70 = vector.broadcast %cst_24 : f32 to vector<16x1xf32>
    %71 = arith.subf %70, %69 : vector<16x1xf32>
    %72 = math.exp %59 : vector<16x4xf32>
    %73 = vector.broadcast %14 : vector<1x4xf32> to vector<16x4xf32>
    %74 = arith.mulf %72, %73 : vector<16x4xf32>
    %cst_25 = arith.constant dense<0.000000e+00> : vector<16xf32>
    %75 = vector.multi_reduction <add>, %74, %cst_25 [1] : vector<16x4xf32> to vector<16xf32>
    %76 = vector.shape_cast %75 : vector<16xf32> to vector<16x1xf32>
    %cst_26 = arith.constant 0.000000e+00 : f32
    %77 = vector.broadcast %cst_26 : f32 to vector<16x1xf32>
    %78 = arith.subf %77, %76 : vector<16x1xf32>
    %79 = tpu.iota {dimensions = array<i32: 1>} : vector<16x4xi32>
    %c0_i32 = arith.constant 0 : i32
    %80 = vector.broadcast %c0_i32 : i32 to vector<16x4xi32>
    %81 = arith.cmpi eq, %79, %80 : vector<16x4xi32>
    %c1_i32 = arith.constant 1 : i32
    %82 = vector.broadcast %c1_i32 : i32 to vector<16x4xi32>
    %83 = arith.cmpi eq, %79, %82 : vector<16x4xi32>
    %c2_i32 = arith.constant 2 : i32
    %84 = vector.broadcast %c2_i32 : i32 to vector<16x4xi32>
    %85 = arith.cmpi eq, %79, %84 : vector<16x4xi32>
    %cst_27 = arith.constant 0.000000e+00 : f32
    %86 = vector.shape_cast %78 : vector<16x1xf32> to vector<16x1xf32>
    %87 = vector.broadcast %86 : vector<16x1xf32> to vector<16x4xf32>
    %88 = vector.broadcast %cst_27 : f32 to vector<16x4xf32>
    %89 = arith.select %85, %87, %88 : vector<16x4xi1>, vector<16x4xf32>
    %90 = vector.shape_cast %71 : vector<16x1xf32> to vector<16x1xf32>
    %91 = vector.broadcast %90 : vector<16x1xf32> to vector<16x4xf32>
    %92 = arith.select %83, %91, %89 : vector<16x4xi1>, vector<16x4xf32>
    %93 = vector.shape_cast %65 : vector<16x1xf32> to vector<16x1xf32>
    %94 = vector.broadcast %93 : vector<16x1xf32> to vector<16x4xf32>
    %95 = arith.select %81, %94, %92 : vector<16x4xi1>, vector<16x4xf32>
    %c0_28 = arith.constant 0 : index
    %c0_29 = arith.constant 0 : index
    %96 = vector.load %arg2[%c0_28, %c0_29] : memref<16x128xf32, #tpu.memory_space<vmem>>, vector<16x32xf32>
    tpu.vector_store %arg2[%c0_28, %c0_29], %9 {strides = array<i32>} : memref<16x128xf32, #tpu.memory_space<vmem>>, vector<16x32xf32>,
    %c0_30 = arith.constant 0 : index
    %c32_31 = arith.constant 32 : index
    %97 = vector.load %arg2[%c0_30, %c32_31] : memref<16x128xf32, #tpu.memory_space<vmem>>, vector<16x32xf32>
    tpu.vector_store %arg2[%c0_30, %c32_31], %43 {strides = array<i32>} : memref<16x128xf32, #tpu.memory_space<vmem>>, vector<16x32xf32>,
    %c0_32 = arith.constant 0 : index
    %c64_33 = arith.constant 64 : index
    %98 = vector.load %arg2[%c0_32, %c64_33] : memref<16x128xf32, #tpu.memory_space<vmem>>, vector<16x32xf32>
    tpu.vector_store %arg2[%c0_32, %c64_33], %61 {strides = array<i32>} : memref<16x128xf32, #tpu.memory_space<vmem>>, vector<16x32xf32>,
    %c0_34 = arith.constant 0 : index
    %c96_35 = arith.constant 96 : index
    %99 = vector.load %arg2[%c0_34, %c96_35] : memref<16x128xf32, #tpu.memory_space<vmem>>, vector<16x4xf32>
    tpu.vector_store %arg2[%c0_34, %c96_35], %59 {strides = array<i32>} : memref<16x128xf32, #tpu.memory_space<vmem>>, vector<16x4xf32>,
    %c0_36 = arith.constant 0 : index
    %c100 = arith.constant 100 : index
    %100 = vector.load %arg2[%c0_36, %c100] : memref<16x128xf32, #tpu.memory_space<vmem>>, vector<16x4xf32>
    tpu.vector_store %arg2[%c0_36, %c100], %95 {strides = array<i32>} : memref<16x128xf32, #tpu.memory_space<vmem>>, vector<16x4xf32>,
    return
  }
}

</mosaic_0001>

<bundles_post_ra>
// kernel: tpu_custom_call.1
= control target key start
LH: loop header
LB: loop body
LE: loop exit
PB: predicated region body
PF: predicated region fallthrough
CT: control target
= control target key end

     0   :  { %7 = vsyncpa [#allocation3], 0  ;;  %s1404_s0 = inlined_call_operand.hbm [shape: f32[16,96], index: 0, kind: input, shape index: {}]   ;;  %s1405_s1 = inlined_call_operand.hbm [shape: f32[184,128], index: 1, kind: input, shape index: {}]   ;;  %s1406_s2 = inlined_call_operand.hbm [shape: f32[16,128], index: 2, kind: output, shape index: {}]  }
   0x1   :  { %8 = vsyncpa [#allocation6], 0 }
   0x2   :  { %9 = vsyncpa [#allocation4], 0  ;;  %s1220_s9 = smov [#allocation2]   ;;  %s1148_s13 = scalar_lea.hbm %s1404_s0, 256 }
   0x3   :  { %s15_s10 = sshll.u32 %s1220_s9, 4  ;;  %p1149_p0 = scmp.ne.s32.totalorder %s1404_s0, %s1148_s13  ;;  %s16_s10 = int_to_ptr.vmem [resolvable:$true] %s15_s10 }
   0x4   :  { %p1152_p1 = scmp.lt.u32.totalorder %s1148_s13, %s1404_s0 }
   0x6   :  { %p1154_p2 = pnand %p1152_p1, %p1149_p0 }
   0x8   :  { %1157 = shalt.err (!%p1154_p2)
}
   0x9   :  { %s1158_s18 = scalar_lea.vmem %s16_s10, 256  ;;  %p1163_p4 = scmp.lt.s32.totalorder %s16_s10, %s16_s10 }
   0xa   :  { %p1159_p3 = scmp.ne.s32.totalorder %s16_s10, %s1158_s18  ;;  %p1164_p5 = scmp.lt.s32.totalorder %s1158_s18, %s1158_s18 }
   0xc   :  { %p1165_p6 = por %p1164_p5, %p1163_p4 }
   0xe   :  { %p1166_p7 = pnand %p1165_p6, %p1159_p3 }
  0x10   :  { %1169 = shalt.err (!%p1166_p7)
}
  0x11   :  { %s1221_s19 = smov 128   ;;  %s1222_s20 = smov 8  }
  0x12   :  { %21 = dma.hbm_to_vmem [thread:$0]  %s1404_s0, 256, %s16_s10, [#allocation3], %s1221_s19, %s1221_s19, %s1222_s20  }
  0x13   :  { %s1223_s23 = smov [#allocation5]   ;;  %s1170_s27 = scalar_lea.hbm %s1405_s1, 2944 }
  0x14   :  { %s27_s24 = sshll.u32 %s1223_s23, 4  ;;  %p1171_p8 = scmp.ne.s32.totalorder %s1405_s1, %s1170_s27  ;;  %s28_s24 = int_to_ptr.vmem [resolvable:$true] %s27_s24 }
  0x15   :  { %p1174_p9 = scmp.lt.u32.totalorder %s1170_s27, %s1405_s1 }
  0x17   :  { %p1176_p10 = pnand %p1174_p9, %p1171_p8 }
  0x19   :  { %1179 = shalt.err (!%p1176_p10)
}
  0x1a   :  { %s1180_s4 = scalar_lea.vmem %s28_s24, 2944  ;;  %p1185_p12 = scmp.lt.s32.totalorder %s28_s24, %s28_s24 }
  0x1b   :  { %p1181_p11 = scmp.ne.s32.totalorder %s28_s24, %s1180_s4  ;;  %p1186_p13 = scmp.lt.s32.totalorder %s1180_s4, %s1180_s4 }
  0x1d   :  { %p1187_p0 = por %p1186_p13, %p1185_p12 }
  0x1f   :  { %p1188_p1 = pnand %p1187_p0, %p1181_p11 }
  0x21   :  { %1191 = shalt.err (!%p1188_p1)
}
  0x22   :  { %33 = dma.hbm_to_vmem [thread:$0]  %s1405_s1, 2944, %s28_s24, [#allocation6], %s1221_s19, %s1221_s19, %s1222_s20  }
  0x23   :  { %1214 = dma.done.wait [#allocation3], 256  }
  0x24   :  { %1215 = vsyncadd [#allocation3], 4294967040 }
  0x25   :  { %1216 = dma.done.wait [#allocation6], 2944  }
  0x26   :  { %1217 = vsyncadd [#allocation6], 4294964352  ;;  %vm105_vm0 = vcmask 523264   ;;  %v1280_v0 = vld [vmem:[#allocation2] sm:$0xff]  ;;  %v1282_v1 = vld [vmem:[#allocation2 + $0x8] sm:$0xff]  ;;  %s1224_s1 = smov 32  }
  0x27   :  { %v74_v2 = vld [vmem:[#allocation5 + $0x20] sm:$0xff]  ;;  %v93_v3 = vmul.f32 %v1280_v0, %v1280_v0  ;;  %v75_v4 = vld [vmem:[#allocation5 + $0x28] sm:$0xff]  ;;  %v76_v5 = vld [vmem:[#allocation5 + $0x30] sm:$0xff]  ;;  %1020 = vmatprep.mubr.msk.f32.mxu0 %vm105_vm0, %v1280_v0  ;;  %v94_v9 = vmul.f32 %v1282_v1, %v1282_v1  ;;  %v42_v19 = vmul.f32 0.5, %v1280_v0  ;;  %v43_v21 = vmul.f32 0.5, %v1282_v1  ;;  %s1225_s6 = smov 96  }
  0x28   :  { %v77_v6 = vld [vmem:[#allocation5 + $0x38] sm:$0xff]  ;;  %v1072_v7 = vpack.c.bf16 %v75_v4, %v74_v2  ;;  %v78_v10 = vld [vmem:[#allocation5 + $0x40] sm:$0xff]  ;;  %v79_v11 = vld [vmem:[#allocation5 + $0x48] sm:$0xff]  ;;  %vm191_vm1 = vcmask 261120   ;;  %s1226_s7 = smov 112   ;;  %s1227_s8 = smov 120  }
  0x29   :  { %v1076_v8 = vpack.c.bf16 %v77_v6, %v76_v5  ;;  %97 = vrot.lane.b32.xlu0 %v93_v3, %s1224_s1  ;;  %v1080_v12 = vpack.c.bf16 %v79_v11, %v78_v10  ;;  %v80_v13 = vld [vmem:[#allocation5 + $0x50] sm:$0xff]  ;;  %v81_v14 = vld [vmem:[#allocation5 + $0x58] sm:$0xff]  ;;  %v70_v16 = vld [vmem:[#allocation5] sm:$0xff]  ;;  %v44_v20 = vmul.f32 1.442695, %v42_v19  ;;  %vm320_vm2 = vcmask 1043456  }
  0x2a   :  { %1073 = vmatprep.subr.bf16.mxu0 %v1072_v7  ;;  %v1084_v15 = vpack.c.bf16 %v81_v14, %v80_v13  ;;  %v71_v17 = vld [vmem:[#allocation5 + $0x8] sm:$0xff]  ;;  %v46_v22 = vmul.f32 1.442695, %v43_v21  ;;  %v72_v23 = vld [vmem:[#allocation5 + $0x10] sm:$0xff]  ;;  %v73_v24 = vld [vmem:[#allocation5 + $0x18] sm:$0xff]  ;;  %s1228_s9 = smov 124  }
  0x2b   :  { %1075 = vmatpush3.bf16.msra.mxu0 %v1072_v7  ;;  %v1088_v18 = vpack.c.bf16 %v71_v17, %v70_v16  ;;  %1124 = vpow2.f32 %v44_v20  ;;  %v1092_v25 = vpack.c.bf16 %v73_v24, %v72_v23  ;;  %v949_v36 = vld [vmem:[#allocation5 + $0x60] ss:$0 sm:$0xff]  ;;  %v1308_v37 = vld [vmem:[#allocation5 + $0x68] ss:$0 sm:$0xff]  ;;  %v1318_v48 = vld [vmem:[#allocation5 + $0x78] sm:$0xf] }
  0x2c   :  { %1077 = vmatprep.subr.bf16.mxu0 %v1076_v8  ;;  %1126 = vpow2.f32 %v46_v22  ;;  %1034 = vmatprep.subr.msk.mxu1 %vm320_vm2, %v1318_v48  ;;  %vm313_vm3 = vcmask 31744   ;;  %v86_v57 = vld [vmem:[#allocation5 + $0x80] sm:$0xff]  ;;  %v87_v58 = vld [vmem:[#allocation5 + $0x88] sm:$0xff]  ;;  %v88_v59 = vld [vmem:[#allocation5 + $0x90] sm:$0xff]  ;;  %vm1230_vm4 = vmmov 0   ;;  %v1231_v19 = vmov 0.0  }
  0x2d   :  { %99 = vrot.lane.b32.xlu0 %v94_v9, %s1224_s1  ;;  %1035 = vmatpush3.msk.msra.mxu1 %vm320_vm2, %v1318_v48  ;;  %v1096_v60 = vpack.c.bf16 %v87_v58, %v86_v57  ;;  %v89_v61 = vld [vmem:[#allocation5 + $0x98] sm:$0xff]  ;;  %v1229_v9 = vmov 0.0|0.0   ;;  %v90_v20 = vld [vmem:[#allocation5 + $0xa0] sm:$0x3]  ;;  %vm579_vm5 = vcmask 130048   ;;  %vm653_vm6 = vcmask 25600  }
  0x2e   :  { %v1100_v62 = vpack.c.bf16 %v89_v61, %v88_v59  ;;  %v959_v23 = vld [vmem:[#allocation5 + $0x70] ss:$0 sm:$0xff]  ;;  %vm667_vm7 = vcmask 15360   ;;  %vm674_vm8 = vcmask 1041408   ;;  %s1232_s10 = smov 64   ;;  %s1233_s11 = smov 100  }
  0x2f   :  { %1079 = vmatpush3.bf16.msra.mxu0 %v1076_v8  ;;  %1097 = vmatprep.subr.bf16.mxu1 %v1096_v60  ;;  %vm893_vm12 = vcmask 523520   ;;  %vm904_vm13 = vcmask 785920   ;;  %vm913_vm14 = vcmask 818944   ;;  %vm924_vm15 = vcmask 851744   ;;  %s1234_s12 = smov [#allocation7]  }
  0x30   :  { %1081 = vmatprep.subr.bf16.mxu0 %v1080_v12  ;;  %s932_s13 = sshll.u32 %s1234_s12, 4  ;;  %s933_s13 = int_to_ptr.vmem [resolvable:$true] %s932_s13 }
  0x31   :  { %s1192_s14 = scalar_lea.vmem %s933_s13, 256  ;;  %p1197_p3 = scmp.lt.s32.totalorder %s933_s13, %s933_s13 }
  0x32   :  { %p1193_p2 = scmp.ne.s32.totalorder %s933_s13, %s1192_s14  ;;  %p1198_p4 = scmp.lt.s32.totalorder %s1192_s14, %s1192_s14 }
  0x33   :  { %1083 = vmatpush3.bf16.msra.mxu0 %v1080_v12 }
  0x34   :  { %1085 = vmatprep.subr.bf16.mxu0 %v1084_v15  ;;  %p1199_p5 = por %p1198_p4, %p1197_p3 }
  0x35   :  { %v1296_v26 = vpop.eup %1124 }
  0x36   :  { %v48_v27 = vmul.f32 %v1296_v26, %v1296_v26  ;;  %v1300_v28 = vpop.eup %1126  ;;  %p1200_p6 = pnand %p1199_p5, %p1193_p2 }
  0x37   :  { %1087 = vmatpush3.bf16.msra.mxu0 %v1084_v15  ;;  %v49_v31 = vmul.f32 %v1300_v28, %v1300_v28 }
  0x38   :  { %1089 = vmatprep.subr.bf16.mxu0 %v1088_v18 }
  0x3a   :  { %1021 = vmatmul.mubr.msk.f32.vlgmr.msra.gmra.mrb[0].mxu0 %vm105_vm0, %v1282_v1 }
  0x3b   :  { %1091 = vmatpush3.bf16.msra.mxu0 %v1088_v18 }
  0x3c   :  { %1093 = vmatprep.subr.bf16.mxu0 %v1092_v25 }
  0x3f   :  { %1095 = vmatpush3.bf16.msra.mxu0 %v1092_v25 }
  0x9b   :  { %v98_v29 = vpop.permute.xlu0 %97 }
  0x9c   :  { %v103_v30 = vadd.f32 %v98_v29, %v48_v27 }
  0x9e   :  { %187 = vrot.lane.b32.xlu1 %v103_v30, %s1225_s6 }
  0x9f   :  { %v100_v32 = vpop.permute.xlu0 %99 }
  0xa0   :  { %v104_v33 = vadd.f32 %v100_v32, %v49_v31 }
  0xa2   :  { %189 = vrot.lane.b32.xlu1 %v104_v33, %s1225_s6 }
 0x110   :  { %v188_v34 = vpop.permute.xlu1 %187 }
 0x111   :  { %1031 = vmatprep.mubr.msk.f32.mxu0 %vm191_vm1, %v188_v34 }
 0x114   :  { %v190_v35 = vpop.permute.xlu1 %189 }
 0x115   :  { %1032 = vmatmul.mubr.msk.f32.vlgmr.msra.gmra.mrb[0].mxu0 %vm191_vm1, %v190_v35  ;;  %v91_v35 = vld [vmem:[#allocation5 + $0xa8] sm:$0xff] }
 0x1e8   :  { %v1033_v38 = vpop.f32.mrb[0].mxu0 }
 0x1e9   :  { %v1310_v39 = vadd.f32 %v1033_v38, %v949_v36  ;;  %v262_v40 = vpop.f32.mrb[1].mxu0 }
 0x1ea   :  { %v1312_v41 = vadd.f32 %v949_v36, %v262_v40 }
 0x1eb   :  { %v282_v42 = vsub.f32 %v1308_v37, %v1310_v39 }
 0x1ec   :  { %v281_v43 = vsub.f32 %v1308_v37, %v1312_v41 }
 0x1ed   :  { %287 = vrot.lane.b32.xlu1 %v282_v42, %s1226_s7 }
 0x1ee   :  { %285 = vrot.lane.b32.xlu0 %v281_v43, %s1226_s7 }
 0x25f   :  { %v288_v44 = vpop.permute.xlu1 %287 }
 0x260   :  { %v292_v45 = vmax.f32 %v282_v42, %v288_v44  ;;  %v286_v46 = vpop.permute.xlu0 %285  ;;  %v92_v44 = vld [vmem:[#allocation5 + $0xb0] sm:$0xff] }
 0x261   :  { %v291_v47 = vmax.f32 %v281_v43, %v286_v46 }
 0x262   :  { %297 = vrot.lane.b32.xlu1 %v292_v45, %s1227_s8 }
 0x263   :  { %295 = vrot.lane.b32.xlu0 %v291_v47, %s1227_s8 }
 0x2d4   :  { %v298_v49 = vpop.permute.xlu1 %297 }
 0x2d5   :  { %v302_v50 = vmax.f32 %v292_v45, %v298_v49  ;;  %v296_v51 = vpop.permute.xlu0 %295 }
 0x2d6   :  { %v301_v52 = vmax.f32 %v291_v47, %v296_v51 }
 0x2d7   :  { %307 = vrot.lane.b32.xlu1 %v302_v50, %s1228_s9 }
 0x2d8   :  { %305 = vrot.lane.b32.xlu0 %v301_v52, %s1228_s9 }
 0x349   :  { %v308_v53 = vpop.permute.xlu1 %307 }
 0x34a   :  { %v306_v54 = vpop.permute.xlu0 %305  ;;  %v312_v56 = vmax.f32 %v302_v50, %v308_v53 }
 0x34b   :  { %v311_v55 = vmax.f32 %v301_v52, %v306_v54 }
 0x34d   :  { %1036 = vmatprep.mubr.msk.f32.mxu1 %vm313_vm3, %v311_v55 }
 0x34e   :  { %1037 = vmatmul.mubr.msk.f32.vlgmr.msra.gmra.mrb[0].mxu1 %vm313_vm3, %v312_v56 }
 0x34f   :  { %1099 = vmatpush3.bf16.msra.mxu1 %v1096_v60 }
 0x350   :  { %1101 = vmatprep.subr.bf16.mxu1 %v1100_v62 }
 0x353   :  { %1103 = vmatpush3.bf16.msra.mxu1 %v1100_v62 }
 0x354   :  { %1050 = vmatprep.subr.msk.mxu1 %vm320_vm2, %v1318_v48 }
 0x421   :  { %v1038_v63 = vpop.f32.mrb[0].mxu1 }
 0x422   :  { %v1328_v2 = vsub.f32 %v282_v42, %v1038_v63  ;;  %v390_v3 = vpop.f32.mrb[1].mxu1 }
 0x423   :  { %v1330_v4 = vsub.f32 %v281_v43, %v390_v3 }
 0x424   :  { %v403_v5 = vmul.f32 1.442695, %v1328_v2 }
 0x425   :  { %v401_v6 = vmul.f32 1.442695, %v1330_v4 }
 0x427   :  { %1128 = vpow2.f32 %v401_v6 }
 0x428   :  { %1130 = vpow2.f32 %v403_v5 }
 0x431   :  { %v1129_v7 = vpop.eup %1128 }
 0x432   :  { %v1131_v8 = vpop.eup %1130  ;;  %1047 = vmatprep.mubr.msk.f32.mxu1 %vm191_vm1, %v1129_v7 }
 0x433   :  { %1048 = vmatmul.mubr.msk.f32.vlgmr.msra.gmra.mrb[2].mxu1 %vm191_vm1, %v1131_v8 }
 0x434   :  { %1051 = vmatpush3.msk.msra.mxu1 %vm320_vm2, %v1318_v48 }
 0x435   :  { %1104 = vmatprep.subr.bf16.mxu1 %v1229_v9 }
 0x506   :  { %v1049_v10 = vpop.f32.mrb[2].mxu1 }
 0x507   :  { %1132 = vlog2.f32 %v1049_v10  ;;  %v477_v11 = vpop.f32.mrb[3].mxu1 }
 0x508   :  { %1134 = vlog2.f32 %v477_v11 }
 0x511   :  { %v1133_v12 = vpop.eup %1132 }
 0x512   :  { %v1135_v13 = vpop.eup %1134  ;;  %v489_v14 = vmul.f32 0.6931472, %v1133_v12 }
 0x513   :  { %v487_v15 = vmul.f32 0.6931472, %v1135_v13 }
 0x514   :  { %v574_v16 = vadd.f32 %v489_v14, %v312_v56 }
 0x515   :  { %v573_v17 = vadd.f32 %v487_v15, %v311_v55  ;;  %1052 = vmatprep.mubr.msk.f32.mxu1 %vm313_vm3, %v487_v15 }
 0x516   :  { %1053 = vmatmul.mubr.msk.f32.vlgmr.msra.gmra.mrb[4].mxu1 %vm313_vm3, %v489_v14 }
 0x517   :  { %v1105_v18 = vpack.c.bf16 %v574_v16, %v573_v17  ;;  %1059 = vmatprep.mubr.msk.f32.mxu1 %vm1230_vm4, %v1231_v19 }
 0x519   :  { %1106 = vmatpush3.bf16.msra.mxu1 %v1105_v18 }
 0x51c   :  { %1060 = vmatmul.mubr.msk.f32.vlgmr.msra.gmra.mrb[6].mxu1 %vm579_vm5, %v90_v20 }
 0x51d   :  { %1064 = vmatprep.mubr.msk.f32.mxu1 %vm667_vm7, %v91_v35 }
 0x5e9   :  { %v1054_v21 = vpop.f32.mrb[4].mxu1 }
 0x5ea   :  { %v562_v22 = vpop.f32.mrb[5].mxu1  ;;  %v572_v55 = vsub.f32 %v1328_v2, %v1054_v21 }
 0x5eb   :  { %v571_v56 = vsub.f32 %v1330_v4, %v562_v22 }
 0x5ef   :  { %v649_v24 = vpop.f32.mrb[6].mxu1 }
 0x5f0   :  { %v650_v25 = vadd.f32 %v959_v23, %v649_v24  ;;  %v1061_v27 = vpop.f32.mrb[7].mxu1 }
 0x5f2   :  { %v654_v29 = vsel %vm653_vm6, %v650_v25, -inf }
 0x5f3   :  { %655 = vmax.xlane.f32.xlu0 %v654_v29 }
 0x680   :  { %v656_v30 = vpop.xlane.xlu0 %655 }
 0x681   :  { %v657_v31 = vsub.f32 %v650_v25, %v656_v30 }
 0x683   :  { %v658_v32 = vmul.f32 1.442695, %v657_v31 }
 0x685   :  { %1136 = vpow2.f32 %v658_v32 }
 0x68f   :  { %v1137_v33 = vpop.eup %1136 }
 0x690   :  { %v660_v34 = vsel %vm653_vm6, %v1137_v33, 0.0 }
 0x691   :  { %661 = vadd.xlane.f32.xlu1 %v660_v34 }
 0x71e   :  { %v662_v36 = vpop.xlane.xlu1 %661 }
 0x71f   :  { %1138 = vlog2.f32 %v662_v36 }
 0x729   :  { %v1139_v38 = vpop.eup %1138 }
 0x72a   :  { %v664_v40 = vmul.f32 0.6931472, %v1139_v38 }
 0x72c   :  { %v665_v42 = vadd.f32 %v664_v40, %v656_v30 }
 0x72e   :  { %v666_v43 = vsub.f32 %v650_v25, %v665_v42 }
 0x730   :  { %1062 = vmatprep.subr.msk.mxu1 %vm674_vm8, %v666_v43 }
 0x731   :  { %1063 = vmatpush3.msk.msra.mxu1 %vm674_vm8, %v666_v43 }
 0x732   :  { %1065 = vmatmul.mubr.msk.f32.vlgmr.msra.gmra.mrb[8].mxu1 %vm667_vm7, %v92_v44  ;;  %1067 = vmatprep.subr.msk.mxu1 %vm320_vm2, %v1318_v48 }
 0x733   :  { %1068 = vmatpush3.msk.msra.mxu1 %vm320_vm2, %v1318_v48 }
 0x805   :  { %v1344_v45 = vpop.f32.mrb[8].mxu1 }
 0x806   :  { %v860_v46 = vmul.f32 1.442695, %v1344_v45  ;;  %v744_v47 = vpop.f32.mrb[9].mxu1 }
 0x807   :  { %v858_v49 = vmul.f32 1.442695, %v744_v47  ;;  %1069 = vmatprep.mubr.msk.f32.mxu1 %vm313_vm3, %v744_v47 }
 0x808   :  { %1140 = vpow2.f32 %v860_v46  ;;  %1070 = vmatmul.mubr.msk.f32.vlgmr.msra.gmra.mrb[10].mxu1 %vm313_vm3, %v1344_v45 }
 0x809   :  { %1142 = vpow2.f32 %v858_v49 }
 0x812   :  { %v1141_v50 = vpop.eup %1140 }
 0x813   :  { %v1143_v51 = vpop.eup %1142  ;;  %v863_v52 = vmul.f32 %v1141_v50, %v959_v23 }
 0x814   :  { %v862_v54 = vmul.f32 %v1143_v51, %v959_v23 }
 0x815   :  { %v867_v53 = vsel %vm313_vm3, %v863_v52, 0.0 }
 0x816   :  { %868 = vadd.xlane.f32.xlu0 %v867_v53  ;;  %v864_v48 = vsel %vm313_vm3, %v862_v54, 0.0 }
 0x81a   :  { %865 = vadd.xlane.f32.xlu0 %v864_v48 }
 0x8db   :  { %v1071_v57 = vpop.f32.mrb[10].mxu1 }
 0x8dc   :  { %v835_v58 = vadd.f32 %v1071_v57, %v572_v55  ;;  %v825_v59 = vpop.f32.mrb[11].mxu1 }
 0x8dd   :  { %v834_v60 = vadd.f32 %v825_v59, %v571_v56 }
 0x8de   :  { %v838_v61 = vmul.f32 1.442695, %v835_v58 }
 0x8df   :  { %v836_v62 = vmul.f32 1.442695, %v834_v60 }
 0x8e0   :  { %1144 = vpow2.f32 %v838_v61 }
 0x8e1   :  { %1146 = vpow2.f32 %v836_v62 }
 0x8ea   :  { %v1145_v63 = vpop.eup %1144 }
 0x8eb   :  { %v1147_v3 = vpop.eup %1146  ;;  %v849_v5 = vmul.f32 %v1145_v63, %v1308_v37  ;;  %v841_v2 = vmul.f32 %v1145_v63, %v1310_v39  ;;  %v872_v39 = vlaneseq }
 0x8ec   :  { %v848_v6 = vmul.f32 %v1147_v3, %v1308_v37  ;;  %v840_v8 = vmul.f32 %v1147_v3, %v1312_v41  ;;  %v869_v37 = vpop.xlane.xlu0 %868 }
 0x8ed   :  { %v853_v7 = vsel %vm191_vm1, %v849_v5, 0.0  ;;  %v845_v9 = vsel %vm191_vm1, %v841_v2, 0.0  ;;  %v873_v11 = vand.u32 127, %v872_v39  ;;  %v871_v25 = vsub.f32 0.0, %v869_v37 }
 0x8ee   :  { %854 = vadd.xlane.f32.xlu0 %v853_v7  ;;  %v850_v4 = vsel %vm191_vm1, %v848_v6, 0.0  ;;  %v842_v10 = vsel %vm191_vm1, %v840_v8, 0.0 }
 0x8ef   :  { %851 = vadd.xlane.f32.xlu1 %v850_v4  ;;  %vm875_vm9 = vcmp.eq.s32.totalorder %v873_v11, 1  ;;  %vm876_vm10 = vcmp.eq.s32.totalorder %v873_v11, 2  ;;  %vm874_vm11 = vcmp.eq.s32.totalorder %v873_v11, 0 }
 0x8f0   :  { %v866_v41 = vpop.xlane.xlu0 %865  ;;  %v878_v29 = vsel %vm876_vm10, %v871_v25, 0.0 }
 0x8f1   :  { %v870_v12 = vsub.f32 0.0, %v866_v41 }
 0x8f2   :  { %846 = vadd.xlane.f32.xlu0 %v845_v9 }
 0x8f3   :  { %843 = vadd.xlane.f32.xlu1 %v842_v10  ;;  %v877_v16 = vsel %vm876_vm10, %v870_v12, 0.0 }
 0x904   :  { %52 = vrot.lane.b32.xlu1 %v1280_v0, %s1225_s6 }
 0x908   :  { %54 = vrot.lane.b32.xlu0 %v1282_v1, %s1225_s6 }
 0x90c   :  { %887 = vrot.lane.b32.xlu0 %v571_v56, %s1224_s1 }
 0x910   :  { %898 = vrot.lane.b32.xlu0 %v834_v60, %s1232_s10 }
 0x914   :  { %907 = vrot.lane.b32.xlu0 %v744_v47, %s1225_s6 }
 0x97b   :  { %v855_v13 = vpop.xlane.xlu0 %854 }
 0x97c   :  { %v852_v14 = vpop.xlane.xlu1 %851  ;;  %v857_v27 = vsub.f32 0.0, %v855_v13 }
 0x97d   :  { %v856_v15 = vsub.f32 0.0, %v852_v14 }
 0x97e   :  { %v880_v30 = vsel %vm875_vm9, %v857_v27, %v878_v29 }
 0x97f   :  { %v879_v17 = vsel %vm875_vm9, %v856_v15, %v877_v16  ;;  %v847_v18 = vpop.xlane.xlu0 %846 }
 0x980   :  { %v844_v19 = vpop.xlane.xlu1 %843 }
 0x981   :  { %v881_v20 = vsel %vm874_vm11, %v844_v19, %v879_v17 }
 0x982   :  { %918 = vrot.lane.b32.xlu0 %v881_v20, %s1233_s11 }
 0x983   :  { %v55_v23 = vpop.permute.xlu0 %54 }
 0x984   :  { %v53_v21 = vpop.permute.xlu1 %52  ;;  %v59_v24 = vmul.f32 %v1300_v28, %v55_v23 }
 0x985   :  { %v58_v22 = vmul.f32 %v1296_v26, %v53_v21  ;;  %v882_v26 = vsel %vm874_vm11, %v847_v18, %v880_v30 }
 0x987   :  { %62 = vrot.lane.b32.xlu1 %v58_v22, %s1225_s6  ;;  %v888_v28 = vpop.permute.xlu0 %887 }
 0x98b   :  { %64 = vrot.lane.b32.xlu1 %v59_v24, %s1225_s6  ;;  %v899_v31 = vpop.permute.xlu0 %898 }
 0x98f   :  { %889 = vrot.lane.b32.xlu1 %v572_v55, %s1224_s1  ;;  %v908_v34 = vpop.permute.xlu0 %907 }
 0x993   :  { %900 = vrot.lane.b32.xlu1 %v835_v58, %s1232_s10 }
 0x997   :  { %909 = vrot.lane.b32.xlu1 %v1344_v45, %s1225_s6 }
 0x99b   :  { %920 = vrot.lane.b32.xlu1 %v882_v26, %s1233_s11 }
 0x9f4   :  { %v919_v38 = vpop.permute.xlu0 %918 }
 0x9f9   :  { %v63_v32 = vpop.permute.xlu1 %62 }
 0x9fa   :  { %v68_v33 = vadd.f32 %v63_v32, %v1280_v0 }
 0x9fc   :  { %883 = vst.msk [vmem:[#allocation7] sm:$0xff] %vm191_vm1, %v68_v33 }
 0x9fd   :  { %v65_v35 = vpop.permute.xlu1 %64  ;;  %894 = vst.msk [vmem:[#allocation7] sm:$0xff] %vm893_vm12, %v888_v28 }
 0x9fe   :  { %v69_v36 = vadd.f32 %v65_v35, %v1282_v1  ;;  %905 = vst.msk [vmem:[#allocation7] sm:$0xff] %vm904_vm13, %v899_v31 }
 0x9ff   :  { %914 = vst.msk [vmem:[#allocation7] sm:$0xff] %vm913_vm14, %v908_v34 }
 0xa00   :  { %884 = vst.msk [vmem:[#allocation7 + $0x8] sm:$0xff] %vm191_vm1, %v69_v36 }
 0xa01   :  { %925 = vst.msk [vmem:[#allocation7] sm:$0xff] %vm924_vm15, %v919_v38  ;;  %v890_v0 = vpop.permute.xlu1 %889 }
 0xa02   :  { %895 = vst.msk [vmem:[#allocation7 + $0x8] sm:$0xff] %vm893_vm12, %v890_v0 }
 0xa05   :  { %v901_v40 = vpop.permute.xlu1 %900 }
 0xa06   :  { %906 = vst.msk [vmem:[#allocation7 + $0x8] sm:$0xff] %vm904_vm13, %v901_v40 }
 0xa09   :  { %v910_v42 = vpop.permute.xlu1 %909 }
 0xa0a   :  { %915 = vst.msk [vmem:[#allocation7 + $0x8] sm:$0xff] %vm913_vm14, %v910_v42 }
 0xa0d   :  { %v921_v43 = vpop.permute.xlu1 %920 }
 0xa0e   :  { %926 = vst.msk [vmem:[#allocation7 + $0x8] sm:$0xff] %vm924_vm15, %v921_v43 }
 0xa0f   :  { %1203 = shalt.err (!%p1200_p6)
}
 0xa10   :  { %s1204_s17 = scalar_lea.hbm %s1406_s2, 256 }
 0xa11   :  { %p1205_p7 = scmp.ne.s32.totalorder %s1406_s2, %s1204_s17  ;;  %p1208_p8 = scmp.lt.u32.totalorder %s1204_s17, %s1406_s2 }
 0xa13   :  { %p1210_p9 = pnand %p1208_p8, %p1205_p7 }
 0xa15   :  { %1213 = shalt.err (!%p1210_p9)
}
 0xa16   :  { %938 = dma.vmem_to_hbm [thread:$0]  %s933_s13, 256, %s1406_s2, [#allocation4], %s1221_s19, %s1221_s19, %s1222_s20  }
 0xa17   :  { %1218 = dma.done.wait [#allocation4], 256  }
 0xa18   :  { %1219 = vsyncadd [#allocation4], 4294967040 }
 0xa19   :  { %942 = vsyncpa [#allocation3], 1 }
 0xa1a   :  { %943 = vsyncpa [#allocation6], 1 }
 0xa1b   :  { %944 = vsyncpa [#allocation4], 1 }

</bundles_post_ra>
